<compile_context>
chip_gen: v7x
topology: tpu7x:2x2x1
jax: 0.10.0
libtpu: 0.0.40
codegen_flags: <defaults>
</compile_context>

<pallas_src>
import jax
import jax.numpy as jnp
from jax.experimental import pallas as pl
from jax.experimental.pallas import tpu as pltpu

EMB = 5
N_NODES = 4 * 2                        # 8 nodes per direction -> 4*2*2*EMB = 80 graph feats
IN_RAW = 4 * 2 * 2 * EMB + 4 * 6       # 104
H1 = 128
H2 = 128
H3_RAW, H3_PAD = 64, 128
OUT_RAW, OUT_PAD = 2, 128

COEFF_ENERGY = 0.5                     # BaGTI constants Coeff_Energy / Coeff_Latency
COEFF_LATENCY = 0.5

_LEAKY_SLOPE = 0.01                    # torch.nn.LeakyReLU default


def _find_kernel(x_ref, w1_ref, b1_ref, w2_ref, b2_ref,
                 w3_ref, b3_ref, w4_ref, b4_ref, o_ref):
    # Layer 1: (TM, 104) @ (104, 128) + b1 -> LeakyReLU     (bf16 operands, f32 accumulate)
    h = jnp.dot(x_ref[...].astype(jnp.bfloat16), w1_ref[...],
                preferred_element_type=jnp.float32) + b1_ref[...]
    h = jnp.where(h >= 0, h, _LEAKY_SLOPE * h)
    # Layer 2: (TM, 128) @ (128, 128) + b2 -> LeakyReLU
    h = jnp.dot(h.astype(jnp.bfloat16), w2_ref[...],
                preferred_element_type=jnp.float32) + b2_ref[...]
    h = jnp.where(h >= 0, h, _LEAKY_SLOPE * h)
    # Layer 3: (TM, 128) @ (128, 128-padded) + b3 -> LeakyReLU (padded lanes stay exactly 0)
    h = jnp.dot(h.astype(jnp.bfloat16), w3_ref[...],
                preferred_element_type=jnp.float32) + b3_ref[...]
    h = jnp.where(h >= 0, h, _LEAKY_SLOPE * h)
    # Layer 4: (TM, 128) @ (128, 128-padded) + b4 -> Sigmoid
    h = jnp.dot(h.astype(jnp.bfloat16), w4_ref[...],
                preferred_element_type=jnp.float32) + b4_ref[...]
    # NOTE: padded output lanes [:, 2:] hold sigmoid(0)=0.5; wrapper slices [:, :2].
    o_ref[...] = jax.nn.sigmoid(h)


def find_forward(features, params, *, tm=128):
    """features: (B, 104) f32 = concat(fwd GNN emb, bwd GNN emb, d).

    Returns (combined (B,), sigmoid head (B, 2))."""
    w1, b1, w2, b2, w3, b3, w4, b4 = params
    B = features.shape[0]
    nb = pl.cdiv(B, tm)
    Bp = nb * tm
    features = features.astype(jnp.float32)
    if Bp != B:
        features = jnp.pad(features, ((0, Bp - B), (0, 0)))

    weight_args = (w1, b1, w2, b2, w3, b3, w4, b4)

    def full_spec(arr):
        nd = arr.ndim
        # Constant index_map: block fetched once, stays resident in VMEM across the grid.
        return pl.BlockSpec(arr.shape, lambda i, _nd=nd: (0,) * _nd)

    flops = 2 * Bp * (IN_RAW * H1 + H1 * H2 + H2 * H3_PAD + H3_PAD * OUT_PAD)
    bytes_accessed = (sum(int(a.size) * a.dtype.itemsize for a in weight_args)
                      + Bp * IN_RAW * 4 + Bp * OUT_PAD * 4)
    cost = pl.CostEstimate(flops=flops,
                           transcendentals=Bp * OUT_PAD,
                           bytes_accessed=bytes_accessed)

    out = pl.pallas_call(
        _find_kernel,
        out_shape=jax.ShapeDtypeStruct((Bp, OUT_PAD), jnp.float32),
        grid=(nb,),
        in_specs=[pl.BlockSpec((tm, IN_RAW), lambda i: (i, 0))]
                 + [full_spec(a) for a in weight_args],
        out_specs=pl.BlockSpec((tm, OUT_PAD), lambda i: (i, 0)),
        compiler_params=pltpu.CompilerParams(dimension_semantics=("parallel",)),
        cost_estimate=cost,
    )(features, *weight_args)

    sig = out[:B, :OUT_RAW]                                     # (B, 2) sigmoid head
    combined = COEFF_ENERGY * sig[:, 0] + COEFF_LATENCY * sig[:, 1]
    return combined, sig


def init_params(key):
    """Deterministic synthetic parameters; padded/bf16 copies for the kernel, raw f32 for ref."""
    ks = jax.random.split(key, 8)

    def lin(kw, kb, fan_in, fan_out):
        bound = 1.0 / jnp.sqrt(jnp.float32(fan_in))
        w = jax.random.uniform(kw, (fan_in, fan_out), jnp.float32, -bound, bound)
        b = jax.random.uniform(kb, (fan_out,), jnp.float32, -bound, bound)
        return w, b

    w1, b1 = lin(ks[0], ks[1], IN_RAW, H1)
    w2, b2 = lin(ks[2], ks[3], H1, H2)
    w3, b3 = lin(ks[4], ks[5], H2, H3_RAW)
    w4, b4 = lin(ks[6], ks[7], H3_RAW, OUT_RAW)

    # Kernel copies: weights bf16 (MXU fast path + half the HBM bytes), biases f32.
    # Zero padding of H3/output lanes is mathematically inert.
    w1p = w1.astype(jnp.bfloat16)                                            # (104, 128)
    b1p = b1.reshape(1, H1)
    w2p = w2.astype(jnp.bfloat16)                                            # (128, 128)
    b2p = b2.reshape(1, H2)
    w3p = jnp.zeros((H2, H3_PAD), jnp.bfloat16).at[:, :H3_RAW].set(
        w3.astype(jnp.bfloat16))                                             # (128, 128)
    b3p = jnp.zeros((1, H3_PAD), jnp.float32).at[0, :H3_RAW].set(b3)
    w4p = jnp.zeros((H3_PAD, OUT_PAD), jnp.bfloat16).at[:H3_RAW, :OUT_RAW].set(
        w4.astype(jnp.bfloat16))                                             # (128, 128)
    b4p = jnp.zeros((1, OUT_PAD), jnp.float32).at[0, :OUT_RAW].set(b4)

    padded = (w1p, b1p, w2p, b2p, w3p, b3p, w4p, b4p)
    raw = (w1, b1, w2, b2, w3, b3, w4, b4)
    return padded, raw


def reference_forward(features, raw):
    """Pure-JAX f32 reference of the PyTorch `find` head + combine."""
    w1, b1, w2, b2, w3, b3, w4, b4 = raw
    h = features.astype(jnp.float32)
    h = h @ w1 + b1
    h = jnp.where(h >= 0, h, _LEAKY_SLOPE * h)
    h = h @ w2 + b2
    h = jnp.where(h >= 0, h, _LEAKY_SLOPE * h)
    h = h @ w3 + b3
    h = jnp.where(h >= 0, h, _LEAKY_SLOPE * h)
    sig = jax.nn.sigmoid(h @ w4 + b4)
    combined = COEFF_ENERGY * sig[:, 0] + COEFF_LATENCY * sig[:, 1]
    return combined, sig


if __name__ == "__main__":
    key = jax.random.PRNGKey(0)
    k_param, k_xf, k_xb, k_d = jax.random.split(key, 4)

    params, raw = init_params(k_param)

    B = 256
    # TODO(synk): stand-in GNN node embeddings (the DGL GatedRGCN fwd/bwd passes are not
    # translated); shapes match what the module feeds into `find`.
    x_fwd = jax.random.normal(k_xf, (B, N_NODES, EMB), jnp.float32)
    x_bwd = jax.random.normal(k_xb, (B, N_NODES, EMB), jnp.float32)
    d = jax.random.normal(k_d, (B, 4, 6), jnp.float32)

    features = jnp.concatenate(
        [x_fwd.reshape(B, -1), x_bwd.reshape(B, -1), d.reshape(B, -1)], axis=1)
    assert features.shape == (B, IN_RAW)

    combined, sig = find_forward(features, params, tm=128)
    combined = jax.block_until_ready(combined)
    sig = jax.block_until_ready(sig)

    ref_combined, ref_sig = reference_forward(features, raw)

    assert combined.shape == (B,)
    assert sig.shape == (B, OUT_RAW)
    # bf16 weights vs f32 reference -> relaxed tolerance.
    assert jnp.allclose(sig, ref_sig, atol=2e-2, rtol=2e-2), \
        float(jnp.max(jnp.abs(sig - ref_sig)))
    assert jnp.allclose(combined, ref_combined, atol=2e-2, rtol=2e-2), \
        float(jnp.max(jnp.abs(combined - ref_combined)))

    print("KERNEL_OK")
</pallas_src>

<mosaic_0001>
module attributes {stable_mosaic.version = 11 : i64} {
  func.func @_find_kernel(%arg0: i32, %arg1: memref<128x104xf32, #tpu.memory_space<vmem>>, %arg2: memref<104x128xbf16, #tpu.memory_space<vmem>>, %arg3: memref<1x128xf32, #tpu.memory_space<vmem>>, %arg4: memref<128x128xbf16, #tpu.memory_space<vmem>>, %arg5: memref<1x128xf32, #tpu.memory_space<vmem>>, %arg6: memref<128x128xbf16, #tpu.memory_space<vmem>>, %arg7: memref<1x128xf32, #tpu.memory_space<vmem>>, %arg8: memref<128x128xbf16, #tpu.memory_space<vmem>>, %arg9: memref<1x128xf32, #tpu.memory_space<vmem>>, %arg10: memref<128x128xf32, #tpu.memory_space<vmem>>) attributes {dimension_semantics = [#tpu.dimension_semantics<parallel>], iteration_bounds = array<i64: 2>, scalar_prefetch = 0 : i64, scratch_operands = 0 : i64, tpu.core_type = #tpu.core_type<tc>, window_params = [{transform_indices = @transform_0, window_bounds = array<i64: 128, 104>}, {pipeline_mode = #tpu.pipeline_mode<synchronous>, transform_indices = @transform_1, window_bounds = array<i64: 104, 128>}, {pipeline_mode = #tpu.pipeline_mode<synchronous>, transform_indices = @transform_2, window_bounds = array<i64: 1, 128>}, {pipeline_mode = #tpu.pipeline_mode<synchronous>, transform_indices = @transform_3, window_bounds = array<i64: 128, 128>}, {pipeline_mode = #tpu.pipeline_mode<synchronous>, transform_indices = @transform_4, window_bounds = array<i64: 1, 128>}, {pipeline_mode = #tpu.pipeline_mode<synchronous>, transform_indices = @transform_5, window_bounds = array<i64: 128, 128>}, {pipeline_mode = #tpu.pipeline_mode<synchronous>, transform_indices = @transform_6, window_bounds = array<i64: 1, 128>}, {pipeline_mode = #tpu.pipeline_mode<synchronous>, transform_indices = @transform_7, window_bounds = array<i64: 128, 128>}, {pipeline_mode = #tpu.pipeline_mode<synchronous>, transform_indices = @transform_8, window_bounds = array<i64: 1, 128>}, {transform_indices = @transform_9, window_bounds = array<i64: 128, 128>}]} {
    %c0 = arith.constant 0 : index
    %c0_0 = arith.constant 0 : index
    %0 = vector.load %arg1[%c0, %c0_0] : memref<128x104xf32, #tpu.memory_space<vmem>>, vector<128x104xf32>
    %1 = arith.truncf %0 : vector<128x104xf32> to vector<128x104xbf16>
    %c0_1 = arith.constant 0 : index
    %c0_2 = arith.constant 0 : index
    %2 = vector.load %arg2[%c0_1, %c0_2] : memref<104x128xbf16, #tpu.memory_space<vmem>>, vector<104x128xbf16>
    %cst = arith.constant dense<0.000000e+00> : vector<128x128xf32>
    %3 = tpu.matmul %1, %2, %cst {dimension_numbers = #tpu.dot_dimension_numbers<[1], [0], [0], [1], [0, 0, 1, 1], [], []>} : vector<128x104xbf16>, vector<104x128xbf16>, vector<128x128xf32> -> vector<128x128xf32>
    %c0_3 = arith.constant 0 : index
    %c0_4 = arith.constant 0 : index
    %4 = vector.load %arg3[%c0_3, %c0_4] : memref<1x128xf32, #tpu.memory_space<vmem>>, vector<1x128xf32>
    %5 = vector.broadcast %4 : vector<1x128xf32> to vector<128x128xf32>
    %6 = arith.addf %3, %5 : vector<128x128xf32>
    %cst_5 = arith.constant 0.000000e+00 : f32
    %7 = vector.broadcast %cst_5 : f32 to vector<128x128xf32>
    %8 = arith.cmpf oge, %6, %7 : vector<128x128xf32>
    %cst_6 = arith.constant 0.00999999977 : f32
    %9 = vector.broadcast %cst_6 : f32 to vector<128x128xf32>
    %10 = arith.mulf %9, %6 : vector<128x128xf32>
    %11 = arith.select %8, %6, %10 : vector<128x128xi1>, vector<128x128xf32>
    %12 = arith.truncf %11 : vector<128x128xf32> to vector<128x128xbf16>
    %c0_7 = arith.constant 0 : index
    %c0_8 = arith.constant 0 : index
    %13 = vector.load %arg4[%c0_7, %c0_8] : memref<128x128xbf16, #tpu.memory_space<vmem>>, vector<128x128xbf16>
    %cst_9 = arith.constant dense<0.000000e+00> : vector<128x128xf32>
    %14 = tpu.matmul %12, %13, %cst_9 {dimension_numbers = #tpu.dot_dimension_numbers<[1], [0], [0], [1], [0, 0, 1, 1], [], []>} : vector<128x128xbf16>, vector<128x128xbf16>, vector<128x128xf32> -> vector<128x128xf32>
    %c0_10 = arith.constant 0 : index
    %c0_11 = arith.constant 0 : index
    %15 = vector.load %arg5[%c0_10, %c0_11] : memref<1x128xf32, #tpu.memory_space<vmem>>, vector<1x128xf32>
    %16 = vector.broadcast %15 : vector<1x128xf32> to vector<128x128xf32>
    %17 = arith.addf %14, %16 : vector<128x128xf32>
    %cst_12 = arith.constant 0.000000e+00 : f32
    %18 = vector.broadcast %cst_12 : f32 to vector<128x128xf32>
    %19 = arith.cmpf oge, %17, %18 : vector<128x128xf32>
    %cst_13 = arith.constant 0.00999999977 : f32
    %20 = vector.broadcast %cst_13 : f32 to vector<128x128xf32>
    %21 = arith.mulf %20, %17 : vector<128x128xf32>
    %22 = arith.select %19, %17, %21 : vector<128x128xi1>, vector<128x128xf32>
    %23 = arith.truncf %22 : vector<128x128xf32> to vector<128x128xbf16>
    %c0_14 = arith.constant 0 : index
    %c0_15 = arith.constant 0 : index
    %24 = vector.load %arg6[%c0_14, %c0_15] : memref<128x128xbf16, #tpu.memory_space<vmem>>, vector<128x128xbf16>
    %cst_16 = arith.constant dense<0.000000e+00> : vector<128x128xf32>
    %25 = tpu.matmul %23, %24, %cst_16 {dimension_numbers = #tpu.dot_dimension_numbers<[1], [0], [0], [1], [0, 0, 1, 1], [], []>} : vector<128x128xbf16>, vector<128x128xbf16>, vector<128x128xf32> -> vector<128x128xf32>
    %c0_17 = arith.constant 0 : index
    %c0_18 = arith.constant 0 : index
    %26 = vector.load %arg7[%c0_17, %c0_18] : memref<1x128xf32, #tpu.memory_space<vmem>>, vector<1x128xf32>
    %27 = vector.broadcast %26 : vector<1x128xf32> to vector<128x128xf32>
    %28 = arith.addf %25, %27 : vector<128x128xf32>
    %cst_19 = arith.constant 0.000000e+00 : f32
    %29 = vector.broadcast %cst_19 : f32 to vector<128x128xf32>
    %30 = arith.cmpf oge, %28, %29 : vector<128x128xf32>
    %cst_20 = arith.constant 0.00999999977 : f32
    %31 = vector.broadcast %cst_20 : f32 to vector<128x128xf32>
    %32 = arith.mulf %31, %28 : vector<128x128xf32>
    %33 = arith.select %30, %28, %32 : vector<128x128xi1>, vector<128x128xf32>
    %34 = arith.truncf %33 : vector<128x128xf32> to vector<128x128xbf16>
    %c0_21 = arith.constant 0 : index
    %c0_22 = arith.constant 0 : index
    %35 = vector.load %arg8[%c0_21, %c0_22] : memref<128x128xbf16, #tpu.memory_space<vmem>>, vector<128x128xbf16>
    %cst_23 = arith.constant dense<0.000000e+00> : vector<128x128xf32>
    %36 = tpu.matmul %34, %35, %cst_23 {dimension_numbers = #tpu.dot_dimension_numbers<[1], [0], [0], [1], [0, 0, 1, 1], [], []>} : vector<128x128xbf16>, vector<128x128xbf16>, vector<128x128xf32> -> vector<128x128xf32>
    %c0_24 = arith.constant 0 : index
    %c0_25 = arith.constant 0 : index
    %37 = vector.load %arg9[%c0_24, %c0_25] : memref<1x128xf32, #tpu.memory_space<vmem>>, vector<1x128xf32>
    %38 = vector.broadcast %37 : vector<1x128xf32> to vector<128x128xf32>
    %39 = arith.addf %36, %38 : vector<128x128xf32>
    %40 = arith.negf %39 : vector<128x128xf32>
    %41 = math.exp %40 : vector<128x128xf32>
    %cst_26 = arith.constant 1.000000e+00 : f32
    %42 = vector.broadcast %cst_26 : f32 to vector<128x128xf32>
    %43 = arith.addf %42, %41 : vector<128x128xf32>
    %44 = arith.divf %42, %43 : vector<128x128xf32>
    %c0_27 = arith.constant 0 : index
    %c0_28 = arith.constant 0 : index
    %45 = vector.load %arg10[%c0_27, %c0_28] : memref<128x128xf32, #tpu.memory_space<vmem>>, vector<128x128xf32>
    tpu.vector_store %arg10[%c0_27, %c0_28], %44 {strides = array<i32>} : memref<128x128xf32, #tpu.memory_space<vmem>>, vector<128x128xf32>,
    return
  }
  func.func @transform_0(%arg0: i32) -> (i32, i32) {
    %c0_i32 = arith.constant 0 : i32
    %c0_i32_0 = arith.constant 0 : i32
    return %arg0, %c0_i32 : i32, i32
  }
  func.func @transform_1(%arg0: i32) -> (i32, i32) {
    %c0_i32 = arith.constant 0 : i32
    %c0_i32_0 = arith.constant 0 : i32
    %c0_i32_1 = arith.constant 0 : i32
    return %c0_i32, %c0_i32_0 : i32, i32
  }
  func.func @transform_2(%arg0: i32) -> (i32, i32) {
    %c0_i32 = arith.constant 0 : i32
    %c0_i32_0 = arith.constant 0 : i32
    %c0_i32_1 = arith.constant 0 : i32
    return %c0_i32, %c0_i32_0 : i32, i32
  }
  func.func @transform_3(%arg0: i32) -> (i32, i32) {
    %c0_i32 = arith.constant 0 : i32
    %c0_i32_0 = arith.constant 0 : i32
    %c0_i32_1 = arith.constant 0 : i32
    return %c0_i32, %c0_i32_0 : i32, i32
  }
  func.func @transform_4(%arg0: i32) -> (i32, i32) {
    %c0_i32 = arith.constant 0 : i32
    %c0_i32_0 = arith.constant 0 : i32
    %c0_i32_1 = arith.constant 0 : i32
    return %c0_i32, %c0_i32_0 : i32, i32
  }
  func.func @transform_5(%arg0: i32) -> (i32, i32) {
    %c0_i32 = arith.constant 0 : i32
    %c0_i32_0 = arith.constant 0 : i32
    %c0_i32_1 = arith.constant 0 : i32
    return %c0_i32, %c0_i32_0 : i32, i32
  }
  func.func @transform_6(%arg0: i32) -> (i32, i32) {
    %c0_i32 = arith.constant 0 : i32
    %c0_i32_0 = arith.constant 0 : i32
    %c0_i32_1 = arith.constant 0 : i32
    return %c0_i32, %c0_i32_0 : i32, i32
  }
  func.func @transform_7(%arg0: i32) -> (i32, i32) {
    %c0_i32 = arith.constant 0 : i32
    %c0_i32_0 = arith.constant 0 : i32
    %c0_i32_1 = arith.constant 0 : i32
    return %c0_i32, %c0_i32_0 : i32, i32
  }
  func.func @transform_8(%arg0: i32) -> (i32, i32) {
    %c0_i32 = arith.constant 0 : i32
    %c0_i32_0 = arith.constant 0 : i32
    %c0_i32_1 = arith.constant 0 : i32
    return %c0_i32, %c0_i32_0 : i32, i32
  }
  func.func @transform_9(%arg0: i32) -> (i32, i32) {
    %c0_i32 = arith.constant 0 : i32
    %c0_i32_0 = arith.constant 0 : i32
    return %arg0, %c0_i32 : i32, i32
  }
}

</mosaic_0001>

<bundles_post_ra>
// kernel: tpu_custom_call.1
= control target key start
LH: loop header
LB: loop body
LE: loop exit
PB: predicated region body
PF: predicated region fallthrough
CT: control target
= control target key end

     0   :  { %14 = vsyncpa [#allocation3], 0  ;;  %s2249_s0 = inlined_call_operand.vmem [shape: f32[256,104], index: 0, kind: input, shape index: {}]   ;;  %s2250_s1 = inlined_call_operand.vmem [shape: bf16[104,128], index: 1, kind: input, shape index: {}]   ;;  %s2251_s2 = inlined_call_operand.vmem [shape: f32[1,128], index: 2, kind: input, shape index: {}]   ;;  %s2252_s3 = inlined_call_operand.vmem [shape: bf16[128,128], index: 3, kind: input, shape index: {}]   ;;  %s2253_s4 = inlined_call_operand.vmem [shape: f32[1,128], index: 4, kind: input, shape index: {}]   ;;  %s2254_s5 = inlined_call_operand.vmem [shape: bf16[128,128], index: 5, kind: input, shape index: {}]   ;;  %s2255_s6 = inlined_call_operand.vmem [shape: f32[1,128], index: 6, kind: input, shape index: {}]   ;;  %s2256_s7 = inlined_call_operand.vmem [shape: bf16[128,128], index: 7, kind: input, shape index: {}]   ;;  %s2257_s8 = inlined_call_operand.vmem [shape: f32[1,128], index: 8, kind: input, shape index: {}]   ;;  %s2258_s9 = inlined_call_operand.hbm [shape: f32[256,128], index: 9, kind: output, shape index: {}]  }
   0x1   :  { %16 = vsyncpa [#allocation3 + $0x1], 0  ;;  %s1919_s30 = smov 0   ;;  %s1921_s10 = smov 0  }
   0x2   :  { %s1923_s11 = smov 0   ;;  %s1925_s12 = smov 0  }
   0x3 LB: > { %s1940_s13 = sadd.s32 4294967295, %s1864_s12   ;;  %s1404_s14 = sadd.s32 4294967294, %s1864_s12   ;;  %s1864_s12 = sphi %s1925_s12, %s2264_s12   ;;  %s1860_s11 = sphi %s1923_s11, %s2263_s11   ;;  %s1856_s10 = sphi %s1921_s10, %s2262_s10   ;;  %s1852_s30 = sphi %s1919_s30, %s2261_s30  }
   0x4   : > { %s1944_s15 = sadd.s32 1, %s1864_s12   ;;  %s223_s16 = sadd.s32 1, %s1860_s11 }
   0x5   : > { %s220_s17 = ssub.s32 %s1864_s12, %s1944_s15  ;;  %p233_p0 = scmp.ne.s32.totalorder %s1860_s11, %s1856_s10 }
   0x6   : > { %p221_p1 = scmp.eq.s32.totalorder %s220_s17, 0  ;;  %p234_p2 = scmp.eq.s32.totalorder %s1940_s13, 1 }
   0x7   : > { %p239_p3 = scmp.ne.s32.totalorder %s1856_s10, %s1852_s30  ;;  %p240_p4 = scmp.eq.s32.totalorder %s1404_s14, 1 }
   0x8   : > { %s1955_s18 = scalar_select %p221_p1, %s1860_s11, %s223_s16  }
   0x9   : > { %p1957_p5 = por %p234_p2, %p233_p0  ;;  %p1961_p6 = por %p240_p4, %p239_p3 }
   0xa   : > { %p1407_p7 = scmp.ge.s32.totalorder %s1864_s12, 1  ;;  %p291_p8 = scmp.lt.s32.totalorder %s1864_s12, 3 }
   0xc   : > { %p292_p9 = pnand %p1407_p7, %p291_p8 }
   0xd   : > { %v1707_v0 = vld [vmem:[%s2250_s1] sm:$0xff] (!%p292_p9)   ;;  %v1708_v1 = vld [vmem:[%s2250_s1 + $0x8] sm:$0xff] (!%p292_p9)   ;;  %s1409_s25 = sshll.u32 (!%p292_p9), %s1940_s13, 4  ;;  %v1709_v2 = vld [vmem:[%s2250_s1 + $0x10] sm:$0xff] (!%p292_p9)   ;;  %vm418_vm0 = vcmask (!%p292_p9), 850944   ;;  %vm443_vm1 = vcmask (!%p292_p9), 1043456  }
   0xe   : > { %295 = sbr.rel (%p292_p9) target bundleno = 994 (0x3e2), region = 56  ;;  %1539 = vmatprep.subr.bf16.mxu0 (!%p292_p9), %v1707_v0  ;;  %p328_p10 = scmp.lt.s32.totalorder (!%p292_p9), %s1409_s25, 31  ;;  %v1714_v3 = vld [vmem:[%s2252_s3] sm:$0xff] (!%p292_p9)   ;;  %v1710_v4 = vld [vmem:[%s2250_s1 + $0x18] sm:$0xff] (!%p292_p9)   ;;  %v1713_v9 = vld [vmem:[%s2250_s1 + $0x30] ss:$0 sps:$4 sm:$0xff] (!%p292_p9)  }
   0xf   : > { %1540 = vmatpush3.bf16.msra.mxu0 (!%p292_p9), %v1707_v0  ;;  %1569 = vmatprep.subr.bf16.mxu1 (!%p292_p9), %v1714_v3  ;;  %v1711_v8 = vld [vmem:[%s2250_s1 + $0x20] sm:$0xff] (!%p292_p9)   ;;  %v1715_v10 = vld [vmem:[%s2252_s3 + $0x8] sm:$0xff] (!%p292_p9)   ;;  %v1716_v11 = vld [vmem:[%s2252_s3 + $0x10] sm:$0xff] (!%p292_p9)   ;;  %v445_v13 = vsel (!%p292_p9), %vm443_vm1, %v1713_v9, 0  ;;  %s1866_s22 = smov (!%p292_p9), [#allocation2]  }
  0x10   : > { %1541 = vmatprep.subr.bf16.mxu0 (!%p292_p9), %v1708_v1  ;;  %1570 = vmatpush3.bf16.msra.mxu1 (!%p292_p9), %v1714_v3  ;;  %v1712_v12 = vld [vmem:[%s2250_s1 + $0x28] sm:$0xff] (!%p292_p9)   ;;  %v1717_v14 = vld [vmem:[%s2252_s3 + $0x18] sm:$0xff] (!%p292_p9)   ;;  %v1718_v15 = vld [vmem:[%s2252_s3 + $0x20] sm:$0xff] (!%p292_p9)   ;;  %s1806_s23 = sshll.u32 (!%p292_p9), %s1866_s22, 4  ;;  %s1807_s23 = int_to_ptr.vmem [resolvable:$false] %s1806_s23 }
  0x11   : > { %1571 = vmatprep.subr.bf16.mxu1 (!%p292_p9), %v1715_v10  ;;  %v1719_v37 = vld [vmem:[%s2252_s3 + $0x28] sm:$0xff] (!%p292_p9)   ;;  %v1720_v38 = vld [vmem:[%s2252_s3 + $0x30] sm:$0xff] (!%p292_p9)   ;;  %v1721_v39 = vld [vmem:[%s2252_s3 + $0x38] sm:$0xff] (!%p292_p9)   ;;  %s1808_s24 = scalar_lea.vmem (!%p292_p9), %s1807_s23, 4096 }
  0x12   : > { %v1722_v40 = vld [vmem:[%s2254_s5] sm:$0xff] (!%p292_p9)   ;;  %v1723_v41 = vld [vmem:[%s2254_s5 + $0x8] sm:$0xff] (!%p292_p9)   ;;  %v1724_v42 = vld [vmem:[%s2254_s5 + $0x10] sm:$0xff] (!%p292_p9)  }
  0x13   : > { %1542 = vmatpush3.bf16.msra.mxu0 (!%p292_p9), %v1708_v1  ;;  %v1725_v43 = vld [vmem:[%s2254_s5 + $0x18] sm:$0xff] (!%p292_p9)   ;;  %v1726_v44 = vld [vmem:[%s2254_s5 + $0x20] sm:$0xff] (!%p292_p9)   ;;  %v1727_v45 = vld [vmem:[%s2254_s5 + $0x28] sm:$0xff] (!%p292_p9)  }
  0x14   : > { %1543 = vmatprep.subr.bf16.mxu0 (!%p292_p9), %v1709_v2  ;;  %1572 = vmatpush3.bf16.msra.mxu1 (!%p292_p9), %v1715_v10  ;;  %v2065_v46 = vld [vmem:[%s2251_s2] ss:$0 sm:$0xff] (!%p292_p9) }
  0x15   : > { %s2266_s25 = smov (!%p328_p10, %s1409_s25), 31  ;;  %1573 = vmatprep.subr.bf16.mxu1 %v1716_v11 }
  0x16   : > { %s1410_s28 = sshll.u32 %s2266_s25, 3  ;;  %s324_s25 = sand.u32 1, %s1856_s10  }
  0x17   : > { %s1983_s21 = scalar_lea.vmem %s2249_s0, %s1410_s28  ;;  %1544 = vmatpush3.bf16.msra.mxu0 %v1709_v2  ;;  %s1408_s26 = sshll.u32 %s324_s25, 7 }
  0x18   : > { %v335_v5 = vld [vmem:[%s1983_s21] sm:$0xff]  ;;  %v336_v6 = vld [vmem:[%s1983_s21 + $0x8] sm:$0xff]  ;;  %1545 = vmatprep.subr.bf16.mxu0 %v1710_v4  ;;  %1574 = vmatpush3.bf16.msra.mxu1 %v1716_v11  ;;  %v337_v16 = vld [vmem:[%s1983_s21 + $0x10] sm:$0xff]  ;;  %s2179_s27 = scalar_lea.vmem [#allocation2], %s1408_s26  ;;  %s1475_s28 = sshll.u32 %s1940_s13, 11 }
  0x19   : > { %v351_v7 = vpack.c.bf16 %v336_v6, %v335_v5  ;;  %v338_v17 = vld [vmem:[%s1983_s21 + $0x18] sm:$0xff]  ;;  %1575 = vmatprep.subr.bf16.mxu1 %v1717_v14  ;;  %v339_v18 = vld [vmem:[%s1983_s21 + $0x20] sm:$0xff]  ;;  %v340_v19 = vld [vmem:[%s1983_s21 + $0x28] sm:$0xff]  ;;  %s1342_s29 = sshll.u32 %s2179_s27, 4  ;;  %s2199_s17 = scalar_lea.hbm %s2258_s9, %s1475_s28  ;;  %s2201_s29 = int_to_ptr.vmem [resolvable:$true] %s1342_s29 }
  0x1a   : > { %v352_v20 = vpack.c.bf16 %v338_v17, %v337_v16  ;;  %v353_v21 = vpack.c.bf16 %v340_v19, %v339_v18  ;;  %v341_v22 = vld [vmem:[%s1983_s21 + $0x30] sm:$0xff]  ;;  %v342_v23 = vld [vmem:[%s1983_s21 + $0x38] sm:$0xff]  ;;  %v343_v24 = vld [vmem:[%s1983_s21 + $0x40] sm:$0xff]  ;;  %s2208_s13 = scalar_lea.sflag [#allocation3], %s324_s25  ;;  %p1809_p0 = scmp.lt.s32.totalorder %s2201_s29, %s1807_s23 }
  0x1b   : > { %1553 = vmatprep.mubr.msk.bf16.mxu0 %vm418_vm0, %v351_v7  ;;  %1546 = vmatpush3.bf16.msra.mxu0 %v1710_v4  ;;  %v344_v25 = vld [vmem:[%s1983_s21 + $0x48] sm:$0xff]  ;;  %v354_v26 = vpack.c.bf16 %v342_v23, %v341_v22  ;;  %v345_v28 = vld [vmem:[%s1983_s21 + $0x50] sm:$0xff]  ;;  %v346_v29 = vld [vmem:[%s1983_s21 + $0x58] sm:$0xff] }
  0x1c   : > { %1547 = vmatprep.subr.bf16.mxu0 %v1711_v8  ;;  %1576 = vmatpush3.bf16.msra.mxu1 %v1717_v14  ;;  %v355_v27 = vpack.c.bf16 %v344_v25, %v343_v24  ;;  %v347_v30 = vld [vmem:[%s1983_s21 + $0x60] sm:$0xff]  ;;  %v348_v31 = vld [vmem:[%s1983_s21 + $0x68] sm:$0xff]  ;;  %v356_v32 = vpack.c.bf16 %v346_v29, %v345_v28  ;;  %v349_v34 = vld [vmem:[%s1983_s21 + $0x70] sm:$0xff] }
  0x1d   : > { %1577 = vmatprep.subr.bf16.mxu1 %v1718_v15  ;;  %v357_v33 = vpack.c.bf16 %v348_v31, %v347_v30  ;;  %v350_v35 = vld [vmem:[%s1983_s21 + $0x78] sm:$0xff]  ;;  %s1802_s21 = scalar_lea.vmem %s2201_s29, 2048 }
  0x1e   : > { %v358_v36 = vpack.c.bf16 %v350_v35, %v349_v34  ;;  %p1803_p11 = scmp.ne.s32.totalorder %s2201_s29, %s1802_s21  ;;  %p1810_p1 = scmp.lt.s32.totalorder %s1808_s24, %s1802_s21 }
  0x1f   : > { %1548 = vmatpush3.bf16.msra.mxu0 %v1711_v8 }
  0x20   : > { %1549 = vmatprep.subr.bf16.mxu0 %v1712_v12  ;;  %1578 = vmatpush3.bf16.msra.mxu1 %v1718_v15  ;;  %p1804_p12 = pnand %p1803_p11, %p1957_p5  ;;  %p1811_p2 = por %p1810_p1, %p1809_p0 }
  0x21   : > { %1579 = vmatprep.subr.bf16.mxu1 %v1719_v37 }
  0x22   : > { %p1805_p13 = pneg %p1804_p12 }
  0x23   : > { %1550 = vmatpush3.bf16.msra.mxu0 %v1712_v12 }
  0x24   : > { %1665 = vmatprep.subr.msk.bf16.mxu0 %vm443_vm1, %v1713_v9  ;;  %1580 = vmatpush3.bf16.msra.mxu1 %v1719_v37  ;;  %p1812_p3 = pnand %p1811_p2, %p1805_p13 }
  0x25   : > { %1581 = vmatprep.subr.bf16.mxu1 %v1720_v38 }
  0x27   : > { %1552 = vmatpush3.bf16.msra.mxu0 %v445_v13 }
  0x28   : > { %1582 = vmatpush3.bf16.msra.mxu1 %v1720_v38  ;;  %1601 = vmatprep.subr.bf16.mxu0 %v1722_v40 }
  0x29   : > { %1583 = vmatprep.subr.bf16.mxu1 %v1721_v39 }
  0x2a   : > { %1554 = vmatmul.mubr.msk.bf16.vlgmr.msra.gmra.mrb[0].mxu0 %vm418_vm0, %v352_v20 }
  0x2b   : > { %1557 = vmatprep.mubr.msk.bf16.mxu0 %vm418_vm0, %v353_v21  ;;  %1602 = vmatpush3.bf16.msra.mxu0 %v1722_v40 }
  0x2c   : > { %1584 = vmatpush3.bf16.msra.mxu1 %v1721_v39  ;;  %1603 = vmatprep.subr.bf16.mxu0 %v1723_v41 }
  0x2f   : > { %1604 = vmatpush3.bf16.msra.mxu0 %v1723_v41 }
  0x30   : > { %1605 = vmatprep.subr.bf16.mxu0 %v1724_v42 }
  0x32   : > { %1558 = vmatmul.mubr.msk.bf16.gmra.mrb[4].mxu0 %vm418_vm0, %v354_v26 }
  0x33   : > { %1561 = vmatprep.mubr.msk.bf16.mxu0 %vm418_vm0, %v355_v27  ;;  %1606 = vmatpush3.bf16.msra.mxu0 %v1724_v42 }
  0x34   : > { %1607 = vmatprep.subr.bf16.mxu0 %v1725_v43 }
  0x37   : > { %1608 = vmatpush3.bf16.msra.mxu0 %v1725_v43 }
  0x38   : > { %1609 = vmatprep.subr.bf16.mxu0 %v1726_v44 }
  0x3a   : > { %1562 = vmatmul.mubr.msk.bf16.gmra.mrb[8].mxu0 %vm418_vm0, %v356_v32 }
  0x3b   : > { %1565 = vmatprep.mubr.msk.bf16.mxu0 %vm418_vm0, %v357_v33  ;;  %1610 = vmatpush3.bf16.msra.mxu0 %v1726_v44 }
  0x3c   : > { %1611 = vmatprep.subr.bf16.mxu0 %v1727_v45 }
  0x3f   : > { %1612 = vmatpush3.bf16.msra.mxu0 %v1727_v45 }
  0x42   : > { %1566 = vmatmul.mubr.msk.bf16.gmra.mrb[12].mxu0 %vm418_vm0, %v358_v36 }
  0xfd   : > { %v1555_v47 = vpop.f32.mrb[0].mxu0 }
  0xfe   : > { %v490_v48 = vadd.f32 %v1555_v47, %v2065_v46  ;;  %v481_v49 = vpop.f32.mrb[1].mxu0 }
  0xff   : > { %v482_v50 = vadd.f32 %v2065_v46, %v481_v49  ;;  %v1556_v51 = vpop.f32.mrb[2].mxu0 }
 0x100   : > { %v562_v52 = vmul.f32 0.01, %v490_v48  ;;  %v493_v53 = vadd.f32 %v1556_v51, %v2065_v46  ;;  %v484_v54 = vpop.f32.mrb[3].mxu0  ;;  %vm546_vm2 = vcmp.ge.f32.partialorder %v490_v48, 0.0 }
 0x101   : > { %v560_v55 = vmul.f32 0.01, %v482_v50  ;;  %v485_v56 = vadd.f32 %v2065_v46, %v484_v54  ;;  %vm544_vm4 = vcmp.ge.f32.partialorder %v482_v50, 0.0 }
 0x102   : > { %vm547_vm3 = vcmp.ge.f32.partialorder %v493_v53, 0.0  ;;  %v563_v57 = vmul.f32 0.01, %v493_v53  ;;  %v578_v59 = vsel %vm546_vm2, %v490_v48, %v562_v52 }
 0x103   : > { %v561_v58 = vmul.f32 0.01, %v485_v56  ;;  %vm545_vm5 = vcmp.ge.f32.partialorder %v485_v56, 0.0  ;;  %v576_v62 = vsel %vm544_vm4, %v482_v50, %v560_v55 }
 0x104   : > { %v579_v60 = vsel %vm547_vm3, %v493_v53, %v563_v57  ;;  %v1730_v57 = vld [vmem:[%s2256_s7] sm:$0xff]  }
 0x105   : > { %v1559_v61 = vpop.f32.mrb[4].mxu0  ;;  %v577_v63 = vsel %vm545_vm5, %v485_v56, %v561_v58  ;;  %v593_v0 = vpack.c.bf16 %v579_v60, %v578_v59  ;;  %v1728_v56 = vld [vmem:[%s2254_s5 + $0x30] sm:$0xff]   ;;  %v1731_v58 = vld [vmem:[%s2256_s7 + $0x8] sm:$0xff]   ;;  %1633 = vmatprep.subr.bf16.mxu1 %v1730_v57  ;;  %v1733_v60 = vld [vmem:[%s2256_s7 + $0x18] sm:$0xff]  }
 0x106   : > { %v506_v1 = vadd.f32 %v1559_v61, %v2065_v46  ;;  %v497_v2 = vpop.f32.mrb[5].mxu0  ;;  %v592_v3 = vpack.c.bf16 %v577_v63, %v576_v62  ;;  %1613 = vmatprep.subr.bf16.mxu0 %v1728_v56  ;;  %v1732_v59 = vld [vmem:[%s2256_s7 + $0x10] sm:$0xff]   ;;  %v1734_v61 = vld [vmem:[%s2256_s7 + $0x20] sm:$0xff]   ;;  %v1735_v62 = vld [vmem:[%s2256_s7 + $0x28] sm:$0xff]  }
 0x107   : > { %v498_v4 = vadd.f32 %v2065_v46, %v497_v2  ;;  %v1560_v5 = vpop.f32.mrb[6].mxu0  ;;  %1614 = vmatpush3.bf16.msra.mxu0 %v1728_v56  ;;  %v2110_v63 = vld [vmem:[%s2253_s4] ss:$0 sm:$0xff] }
 0x108   : > { %v566_v6 = vmul.f32 0.01, %v506_v1  ;;  %v509_v7 = vadd.f32 %v1560_v5, %v2065_v46  ;;  %v500_v8 = vpop.f32.mrb[7].mxu0  ;;  %1585 = vmatprep.mubr.bf16.mxu1 %v592_v3  ;;  %vm550_vm6 = vcmp.ge.f32.partialorder %v506_v1, 0.0 }
 0x109   : > { %v564_v9 = vmul.f32 0.01, %v498_v4  ;;  %v501_v10 = vadd.f32 %v2065_v46, %v500_v8  ;;  %1586 = vmatmul.mubr.bf16.vlgmr.msra.gmra.mrb[0].mxu1 %v593_v0  ;;  %vm548_vm7 = vcmp.ge.f32.partialorder %v498_v4, 0.0 }
 0x10a   : > { %vm551_vm8 = vcmp.ge.f32.partialorder %v509_v7, 0.0  ;;  %v567_v11 = vmul.f32 0.01, %v509_v7  ;;  %v582_v13 = vsel %vm550_vm6, %v506_v1, %v566_v6  ;;  %1634 = vmatpush3.bf16.msra.mxu1 %v1730_v57 }
 0x10b   : > { %vm549_vm9 = vcmp.ge.f32.partialorder %v501_v10, 0.0  ;;  %v565_v12 = vmul.f32 0.01, %v501_v10  ;;  %v580_v16 = vsel %vm548_vm7, %v498_v4, %v564_v9  ;;  %1635 = vmatprep.subr.bf16.mxu1 %v1731_v58 }
 0x10c   : > { %v583_v14 = vsel %vm551_vm8, %v509_v7, %v567_v11 }
 0x10d   : > { %v1563_v15 = vpop.f32.mrb[8].mxu0  ;;  %v581_v17 = vsel %vm549_vm9, %v501_v10, %v565_v12  ;;  %v595_v18 = vpack.c.bf16 %v583_v14, %v582_v13 }
 0x10e   : > { %v522_v19 = vadd.f32 %v1563_v15, %v2065_v46  ;;  %v513_v20 = vpop.f32.mrb[9].mxu0  ;;  %v594_v21 = vpack.c.bf16 %v581_v17, %v580_v16  ;;  %1636 = vmatpush3.bf16.msra.mxu1 %v1731_v58 }
 0x10f   : > { %v514_v22 = vadd.f32 %v2065_v46, %v513_v20  ;;  %v1564_v23 = vpop.f32.mrb[10].mxu0  ;;  %1637 = vmatprep.subr.bf16.mxu1 %v1732_v59 }
 0x110   : > { %v570_v24 = vmul.f32 0.01, %v522_v19  ;;  %v525_v25 = vadd.f32 %v1564_v23, %v2065_v46  ;;  %v516_v26 = vpop.f32.mrb[11].mxu0  ;;  %1589 = vmatprep.mubr.bf16.mxu1 %v594_v21  ;;  %vm554_vm10 = vcmp.ge.f32.partialorder %v522_v19, 0.0 }
 0x111   : > { %v568_v27 = vmul.f32 0.01, %v514_v22  ;;  %v517_v28 = vadd.f32 %v2065_v46, %v516_v26  ;;  %1590 = vmatmul.mubr.bf16.gmra.mrb[4].mxu1 %v595_v18  ;;  %vm552_vm11 = vcmp.ge.f32.partialorder %v514_v22, 0.0 }
 0x112   : > { %vm555_vm12 = vcmp.ge.f32.partialorder %v525_v25, 0.0  ;;  %v571_v29 = vmul.f32 0.01, %v525_v25  ;;  %v586_v31 = vsel %vm554_vm10, %v522_v19, %v570_v24  ;;  %1638 = vmatpush3.bf16.msra.mxu1 %v1732_v59 }
 0x113   : > { %vm553_vm13 = vcmp.ge.f32.partialorder %v517_v28, 0.0  ;;  %v569_v30 = vmul.f32 0.01, %v517_v28  ;;  %v584_v34 = vsel %vm552_vm11, %v514_v22, %v568_v27  ;;  %1639 = vmatprep.subr.bf16.mxu1 %v1733_v60 }
 0x114   : > { %v587_v32 = vsel %vm555_vm12, %v525_v25, %v571_v29 }
 0x115   : > { %v1567_v33 = vpop.f32.mrb[12].mxu0  ;;  %v585_v35 = vsel %vm553_vm13, %v517_v28, %v569_v30  ;;  %v597_v36 = vpack.c.bf16 %v587_v32, %v586_v31 }
 0x116   : > { %v538_v37 = vadd.f32 %v1567_v33, %v2065_v46  ;;  %v529_v38 = vpop.f32.mrb[13].mxu0  ;;  %v596_v39 = vpack.c.bf16 %v585_v35, %v584_v34  ;;  %1640 = vmatpush3.bf16.msra.mxu1 %v1733_v60 }
 0x117   : > { %v530_v40 = vadd.f32 %v2065_v46, %v529_v38  ;;  %v1568_v41 = vpop.f32.mrb[14].mxu0  ;;  %1641 = vmatprep.subr.bf16.mxu1 %v1734_v61 }
 0x118   : > { %v574_v42 = vmul.f32 0.01, %v538_v37  ;;  %v541_v43 = vadd.f32 %v1568_v41, %v2065_v46  ;;  %v532_v44 = vpop.f32.mrb[15].mxu0  ;;  %1593 = vmatprep.mubr.bf16.mxu1 %v596_v39  ;;  %vm558_vm14 = vcmp.ge.f32.partialorder %v538_v37, 0.0 }
 0x119   : > { %v572_v45 = vmul.f32 0.01, %v530_v40  ;;  %v533_v47 = vadd.f32 %v2065_v46, %v532_v44  ;;  %1594 = vmatmul.mubr.bf16.gmra.mrb[8].mxu1 %v597_v36  ;;  %vm556_vm15 = vcmp.ge.f32.partialorder %v530_v40, 0.0  ;;  %v1729_v46 = vld [vmem:[%s2254_s5 + $0x38] sm:$0xff]  }
 0x11a   : > { %vm559_vm0 = vcmp.ge.f32.partialorder %v541_v43, 0.0  ;;  %v575_v48 = vmul.f32 0.01, %v541_v43  ;;  %v590_v50 = vsel %vm558_vm14, %v538_v37, %v574_v42  ;;  %1615 = vmatprep.subr.bf16.mxu0 %v1729_v46  ;;  %1642 = vmatpush3.bf16.msra.mxu1 %v1734_v61 }
 0x11b   : > { %vm557_vm1 = vcmp.ge.f32.partialorder %v533_v47, 0.0  ;;  %v573_v49 = vmul.f32 0.01, %v533_v47  ;;  %v588_v52 = vsel %vm556_vm15, %v530_v40, %v572_v45  ;;  %1616 = vmatpush3.bf16.msra.mxu0 %v1729_v46  ;;  %1643 = vmatprep.subr.bf16.mxu1 %v1735_v62 }
 0x11c   : > { %v591_v51 = vsel %vm559_vm0, %v541_v43, %v575_v48 }
 0x11d   : > { %v589_v53 = vsel %vm557_vm1, %v533_v47, %v573_v49  ;;  %v599_v54 = vpack.c.bf16 %v591_v51, %v590_v50 }
 0x11e   : > { %v598_v55 = vpack.c.bf16 %v589_v53, %v588_v52  ;;  %1644 = vmatpush3.bf16.msra.mxu1 %v1735_v62 }
 0x120   : > { %1597 = vmatprep.mubr.bf16.mxu1 %v598_v55 }
 0x121   : > { %1598 = vmatmul.mubr.bf16.gmra.mrb[12].mxu1 %v599_v54 }
 0x1dc   : > { %v1587_v0 = vpop.f32.mrb[0].mxu1 }
 0x1dd   : > { %v714_v1 = vadd.f32 %v1587_v0, %v2110_v63  ;;  %v705_v2 = vpop.f32.mrb[1].mxu1 }
 0x1de   : > { %v706_v3 = vadd.f32 %v2110_v63, %v705_v2  ;;  %v1588_v4 = vpop.f32.mrb[2].mxu1 }
 0x1df   : > { %v786_v5 = vmul.f32 0.01, %v714_v1  ;;  %v717_v6 = vadd.f32 %v1588_v4, %v2110_v63  ;;  %v708_v7 = vpop.f32.mrb[3].mxu1  ;;  %vm770_vm2 = vcmp.ge.f32.partialorder %v714_v1, 0.0 }
 0x1e0   : > { %v784_v8 = vmul.f32 0.01, %v706_v3  ;;  %v709_v9 = vadd.f32 %v2110_v63, %v708_v7  ;;  %vm768_vm3 = vcmp.ge.f32.partialorder %v706_v3, 0.0 }
 0x1e1   : > { %vm771_vm4 = vcmp.ge.f32.partialorder %v717_v6, 0.0  ;;  %v787_v10 = vmul.f32 0.01, %v717_v6  ;;  %v802_v12 = vsel %vm770_vm2, %v714_v1, %v786_v5 }
 0x1e2   : > { %vm769_vm5 = vcmp.ge.f32.partialorder %v709_v9, 0.0  ;;  %v785_v11 = vmul.f32 0.01, %v709_v9  ;;  %v800_v16 = vsel %vm768_vm3, %v706_v3, %v784_v8 }
 0x1e3   : > { %v803_v13 = vsel %vm771_vm4, %v717_v6, %v787_v10  ;;  %v2137_v10 = vld [vmem:[%s2255_s6] ss:$0 sm:$0xff] }
 0x1e4   : > { %v817_v14 = vpack.c.bf16 %v803_v13, %v802_v12  ;;  %v1591_v15 = vpop.f32.mrb[4].mxu1  ;;  %v801_v17 = vsel %vm769_vm5, %v709_v9, %v785_v11  ;;  %v1736_v9 = vld [vmem:[%s2256_s7 + $0x30] sm:$0xff]  }
 0x1e5   : > { %v730_v18 = vadd.f32 %v1591_v15, %v2110_v63  ;;  %v721_v19 = vpop.f32.mrb[5].mxu1  ;;  %v816_v20 = vpack.c.bf16 %v801_v17, %v800_v16  ;;  %1645 = vmatprep.subr.bf16.mxu1 %v1736_v9 }
 0x1e6   : > { %v722_v21 = vadd.f32 %v2110_v63, %v721_v19  ;;  %v1592_v22 = vpop.f32.mrb[6].mxu1  ;;  %1646 = vmatpush3.bf16.msra.mxu1 %v1736_v9 }
 0x1e7   : > { %v790_v23 = vmul.f32 0.01, %v730_v18  ;;  %v733_v24 = vadd.f32 %v1592_v22, %v2110_v63  ;;  %v724_v25 = vpop.f32.mrb[7].mxu1  ;;  %1617 = vmatprep.mubr.bf16.mxu0 %v816_v20  ;;  %vm774_vm6 = vcmp.ge.f32.partialorder %v730_v18, 0.0 }
 0x1e8   : > { %v788_v26 = vmul.f32 0.01, %v722_v21  ;;  %v725_v27 = vadd.f32 %v2110_v63, %v724_v25  ;;  %1618 = vmatmul.mubr.bf16.vlgmr.msra.gmra.mrb[16].mxu0 %v817_v14  ;;  %vm772_vm7 = vcmp.ge.f32.partialorder %v722_v21, 0.0 }
 0x1e9   : > { %vm775_vm8 = vcmp.ge.f32.partialorder %v733_v24, 0.0  ;;  %v791_v28 = vmul.f32 0.01, %v733_v24  ;;  %v806_v30 = vsel %vm774_vm6, %v730_v18, %v790_v23 }
 0x1ea   : > { %vm773_vm9 = vcmp.ge.f32.partialorder %v725_v27, 0.0  ;;  %v789_v29 = vmul.f32 0.01, %v725_v27  ;;  %v804_v33 = vsel %vm772_vm7, %v722_v21, %v788_v26 }
 0x1eb   : > { %v807_v31 = vsel %vm775_vm8, %v733_v24, %v791_v28 }
 0x1ec   : > { %v1595_v32 = vpop.f32.mrb[8].mxu1  ;;  %v805_v34 = vsel %vm773_vm9, %v725_v27, %v789_v29  ;;  %v819_v35 = vpack.c.bf16 %v807_v31, %v806_v30 }
 0x1ed   : > { %v746_v36 = vadd.f32 %v1595_v32, %v2110_v63  ;;  %v737_v37 = vpop.f32.mrb[9].mxu1  ;;  %v818_v38 = vpack.c.bf16 %v805_v34, %v804_v33 }
 0x1ee   : > { %v738_v39 = vadd.f32 %v2110_v63, %v737_v37  ;;  %v1596_v40 = vpop.f32.mrb[10].mxu1 }
 0x1ef   : > { %v794_v41 = vmul.f32 0.01, %v746_v36  ;;  %v749_v42 = vadd.f32 %v1596_v40, %v2110_v63  ;;  %v740_v43 = vpop.f32.mrb[11].mxu1  ;;  %1621 = vmatprep.mubr.bf16.mxu0 %v818_v38  ;;  %vm778_vm10 = vcmp.ge.f32.partialorder %v746_v36, 0.0 }
 0x1f0   : > { %v792_v44 = vmul.f32 0.01, %v738_v39  ;;  %v741_v45 = vadd.f32 %v2110_v63, %v740_v43  ;;  %1622 = vmatmul.mubr.bf16.gmra.mrb[20].mxu0 %v819_v35  ;;  %vm776_vm11 = vcmp.ge.f32.partialorder %v738_v39, 0.0 }
 0x1f1   : > { %vm779_vm12 = vcmp.ge.f32.partialorder %v749_v42, 0.0  ;;  %v795_v47 = vmul.f32 0.01, %v749_v42  ;;  %v810_v49 = vsel %vm778_vm10, %v746_v36, %v794_v41 }
 0x1f2   : > { %vm777_vm13 = vcmp.ge.f32.partialorder %v741_v45, 0.0  ;;  %v793_v48 = vmul.f32 0.01, %v741_v45  ;;  %v808_v52 = vsel %vm776_vm11, %v738_v39, %v792_v44 }
 0x1f3   : > { %v811_v50 = vsel %vm779_vm12, %v749_v42, %v795_v47 }
 0x1f4   : > { %v1599_v51 = vpop.f32.mrb[12].mxu1  ;;  %v809_v53 = vsel %vm777_vm13, %v741_v45, %v793_v48  ;;  %v821_v54 = vpack.c.bf16 %v811_v50, %v810_v49 }
 0x1f5   : > { %v762_v55 = vadd.f32 %v1599_v51, %v2110_v63  ;;  %v753_v56 = vpop.f32.mrb[13].mxu1  ;;  %v820_v46 = vpack.c.bf16 %v809_v53, %v808_v52 }
 0x1f6   : > { %v754_v57 = vadd.f32 %v2110_v63, %v753_v56  ;;  %v1600_v58 = vpop.f32.mrb[14].mxu1 }
 0x1f7   : > { %v798_v59 = vmul.f32 0.01, %v762_v55  ;;  %v765_v60 = vadd.f32 %v1600_v58, %v2110_v63  ;;  %v756_v61 = vpop.f32.mrb[15].mxu1  ;;  %1625 = vmatprep.mubr.bf16.mxu0 %v820_v46  ;;  %vm782_vm14 = vcmp.ge.f32.partialorder %v762_v55, 0.0 }
 0x1f8   : > { %v796_v62 = vmul.f32 0.01, %v754_v57  ;;  %v757_v0 = vadd.f32 %v2110_v63, %v756_v61  ;;  %1626 = vmatmul.mubr.bf16.gmra.mrb[24].mxu0 %v821_v54  ;;  %vm780_vm15 = vcmp.ge.f32.partialorder %v754_v57, 0.0  ;;  %v1737_v63 = vld [vmem:[%s2256_s7 + $0x38] sm:$0xff]  }
 0x1f9   : > { %vm783_vm0 = vcmp.ge.f32.partialorder %v765_v60, 0.0  ;;  %v799_v1 = vmul.f32 0.01, %v765_v60  ;;  %v814_v3 = vsel %vm782_vm14, %v762_v55, %v798_v59  ;;  %1647 = vmatprep.subr.bf16.mxu1 %v1737_v63 }
 0x1fa   : > { %vm781_vm1 = vcmp.ge.f32.partialorder %v757_v0, 0.0  ;;  %v797_v2 = vmul.f32 0.01, %v757_v0  ;;  %v812_v5 = vsel %vm780_vm15, %v754_v57, %v796_v62  ;;  %1648 = vmatpush3.bf16.msra.mxu1 %v1737_v63 }
 0x1fb   : > { %v815_v4 = vsel %vm783_vm0, %v765_v60, %v799_v1 }
 0x1fc   : > { %v813_v6 = vsel %vm781_vm1, %v757_v0, %v797_v2  ;;  %v823_v7 = vpack.c.bf16 %v815_v4, %v814_v3 }
 0x1fd   : > { %v822_v8 = vpack.c.bf16 %v813_v6, %v812_v5 }
 0x1ff   : > { %1629 = vmatprep.mubr.bf16.mxu0 %v822_v8 }
 0x200   : > { %1630 = vmatmul.mubr.bf16.gmra.mrb[28].mxu0 %v823_v7 }
 0x2bb   : > { %v1619_v11 = vpop.f32.mrb[16].mxu0 }
 0x2bc   : > { %v938_v12 = vadd.f32 %v1619_v11, %v2137_v10  ;;  %v929_v13 = vpop.f32.mrb[17].mxu0 }
 0x2bd   : > { %v930_v14 = vadd.f32 %v2137_v10, %v929_v13  ;;  %v1620_v15 = vpop.f32.mrb[18].mxu0 }
 0x2be   : > { %v1010_v16 = vmul.f32 0.01, %v938_v12  ;;  %v941_v17 = vadd.f32 %v1620_v15, %v2137_v10  ;;  %v932_v18 = vpop.f32.mrb[19].mxu0  ;;  %vm994_vm2 = vcmp.ge.f32.partialorder %v938_v12, 0.0 }
 0x2bf   : > { %v1008_v19 = vmul.f32 0.01, %v930_v14  ;;  %v933_v20 = vadd.f32 %v2137_v10, %v932_v18  ;;  %vm992_vm3 = vcmp.ge.f32.partialorder %v930_v14, 0.0 }
 0x2c0   : > { %vm995_vm4 = vcmp.ge.f32.partialorder %v941_v17, 0.0  ;;  %v1011_v21 = vmul.f32 0.01, %v941_v17  ;;  %v1026_v23 = vsel %vm994_vm2, %v938_v12, %v1010_v16 }
 0x2c1   : > { %vm993_vm5 = vcmp.ge.f32.partialorder %v933_v20, 0.0  ;;  %v1009_v22 = vmul.f32 0.01, %v933_v20  ;;  %v1024_v27 = vsel %vm992_vm3, %v930_v14, %v1008_v19 }
 0x2c2   : > { %v1027_v24 = vsel %vm995_vm4, %v941_v17, %v1011_v21 }
 0x2c3   : > { %v1041_v25 = vpack.c.bf16 %v1027_v24, %v1026_v23  ;;  %v1623_v26 = vpop.f32.mrb[20].mxu0  ;;  %v1025_v28 = vsel %vm993_vm5, %v933_v20, %v1009_v22  ;;  %v2158_v20 = vld [vmem:[%s2257_s8] ss:$0 sm:$0xff] }
 0x2c4   : > { %v954_v29 = vadd.f32 %v1623_v26, %v2137_v10  ;;  %v945_v30 = vpop.f32.mrb[21].mxu0  ;;  %v1040_v31 = vpack.c.bf16 %v1025_v28, %v1024_v27 }
 0x2c5   : > { %v946_v32 = vadd.f32 %v2137_v10, %v945_v30  ;;  %v1624_v33 = vpop.f32.mrb[22].mxu0 }
 0x2c6   : > { %v1014_v34 = vmul.f32 0.01, %v954_v29  ;;  %v957_v35 = vadd.f32 %v1624_v33, %v2137_v10  ;;  %v948_v36 = vpop.f32.mrb[23].mxu0  ;;  %1649 = vmatprep.mubr.bf16.mxu1 %v1040_v31  ;;  %vm998_vm6 = vcmp.ge.f32.partialorder %v954_v29, 0.0 }
 0x2c7   : > { %v1012_v37 = vmul.f32 0.01, %v946_v32  ;;  %v949_v38 = vadd.f32 %v2137_v10, %v948_v36  ;;  %1650 = vmatmul.mubr.bf16.vlgmr.msra.gmra.mrb[16].mxu1 %v1041_v25  ;;  %vm996_vm7 = vcmp.ge.f32.partialorder %v946_v32, 0.0 }
 0x2c8   : > { %vm999_vm8 = vcmp.ge.f32.partialorder %v957_v35, 0.0  ;;  %v1015_v39 = vmul.f32 0.01, %v957_v35  ;;  %v1030_v41 = vsel %vm998_vm6, %v954_v29, %v1014_v34 }
 0x2c9   : > { %vm997_vm9 = vcmp.ge.f32.partialorder %v949_v38, 0.0  ;;  %v1013_v40 = vmul.f32 0.01, %v949_v38  ;;  %v1028_v44 = vsel %vm996_vm7, %v946_v32, %v1012_v37 }
 0x2ca   : > { %v1031_v42 = vsel %vm999_vm8, %v957_v35, %v1015_v39 }
 0x2cb   : > { %v1627_v43 = vpop.f32.mrb[24].mxu0  ;;  %v1029_v45 = vsel %vm997_vm9, %v949_v38, %v1013_v40  ;;  %v1043_v47 = vpack.c.bf16 %v1031_v42, %v1030_v41 }
 0x2cc   : > { %v970_v48 = vadd.f32 %v1627_v43, %v2137_v10  ;;  %v961_v49 = vpop.f32.mrb[25].mxu0  ;;  %v1042_v50 = vpack.c.bf16 %v1029_v45, %v1028_v44 }
 0x2cd   : > { %v962_v51 = vadd.f32 %v2137_v10, %v961_v49  ;;  %v1628_v52 = vpop.f32.mrb[26].mxu0 }
 0x2ce   : > { %v1018_v53 = vmul.f32 0.01, %v970_v48  ;;  %v973_v54 = vadd.f32 %v1628_v52, %v2137_v10  ;;  %v964_v55 = vpop.f32.mrb[27].mxu0  ;;  %1653 = vmatprep.mubr.bf16.mxu1 %v1042_v50  ;;  %vm1002_vm10 = vcmp.ge.f32.partialorder %v970_v48, 0.0 }
 0x2cf   : > { %v1016_v56 = vmul.f32 0.01, %v962_v51  ;;  %v965_v46 = vadd.f32 %v2137_v10, %v964_v55  ;;  %1654 = vmatmul.mubr.bf16.gmra.mrb[20].mxu1 %v1043_v47  ;;  %vm1000_vm11 = vcmp.ge.f32.partialorder %v962_v51, 0.0 }
 0x2d0   : > { %vm1003_vm12 = vcmp.ge.f32.partialorder %v973_v54, 0.0  ;;  %v1019_v57 = vmul.f32 0.01, %v973_v54  ;;  %v1034_v59 = vsel %vm1002_vm10, %v970_v48, %v1018_v53 }
 0x2d1   : > { %vm1001_vm13 = vcmp.ge.f32.partialorder %v965_v46, 0.0  ;;  %v1017_v58 = vmul.f32 0.01, %v965_v46  ;;  %v1032_v62 = vsel %vm1000_vm11, %v962_v51, %v1016_v56 }
 0x2d2   : > { %v1035_v60 = vsel %vm1003_vm12, %v973_v54, %v1019_v57 }
 0x2d3   : > { %v1631_v61 = vpop.f32.mrb[28].mxu0  ;;  %v1033_v0 = vsel %vm1001_vm13, %v965_v46, %v1017_v58  ;;  %v1045_v1 = vpack.c.bf16 %v1035_v60, %v1034_v59 }
 0x2d4   : > { %v986_v2 = vadd.f32 %v1631_v61, %v2137_v10  ;;  %v977_v3 = vpop.f32.mrb[29].mxu0  ;;  %v1044_v4 = vpack.c.bf16 %v1033_v0, %v1032_v62 }
 0x2d5   : > { %v978_v5 = vadd.f32 %v2137_v10, %v977_v3  ;;  %v1632_v6 = vpop.f32.mrb[30].mxu0 }
 0x2d6   : > { %v1022_v7 = vmul.f32 0.01, %v986_v2  ;;  %v989_v8 = vadd.f32 %v1632_v6, %v2137_v10  ;;  %v980_v9 = vpop.f32.mrb[31].mxu0  ;;  %1657 = vmatprep.mubr.bf16.mxu1 %v1044_v4  ;;  %vm1006_vm14 = vcmp.ge.f32.partialorder %v986_v2, 0.0 }
 0x2d7   : > { %v1020_v63 = vmul.f32 0.01, %v978_v5  ;;  %v981_v11 = vadd.f32 %v2137_v10, %v980_v9  ;;  %1658 = vmatmul.mubr.bf16.gmra.mrb[24].mxu1 %v1045_v1  ;;  %vm1004_vm15 = vcmp.ge.f32.partialorder %v978_v5, 0.0 }
 0x2d8   : > { %vm1007_vm0 = vcmp.ge.f32.partialorder %v989_v8, 0.0  ;;  %v1023_v12 = vmul.f32 0.01, %v989_v8  ;;  %v1038_v14 = vsel %vm1006_vm14, %v986_v2, %v1022_v7 }
 0x2d9   : > { %vm1005_vm1 = vcmp.ge.f32.partialorder %v981_v11, 0.0  ;;  %v1021_v13 = vmul.f32 0.01, %v981_v11  ;;  %v1036_v16 = vsel %vm1004_vm15, %v978_v5, %v1020_v63 }
 0x2da   : > { %v1039_v15 = vsel %vm1007_vm0, %v989_v8, %v1023_v12 }
 0x2db   : > { %v1037_v17 = vsel %vm1005_vm1, %v981_v11, %v1021_v13  ;;  %v1047_v18 = vpack.c.bf16 %v1039_v15, %v1038_v14 }
 0x2dc   : > { %v1046_v19 = vpack.c.bf16 %v1037_v17, %v1036_v16 }
 0x2de   : > { %1661 = vmatprep.mubr.bf16.mxu1 %v1046_v19 }
 0x2df   : > { %1662 = vmatmul.mubr.bf16.gmra.mrb[28].mxu1 %v1047_v18 }
 0x39a   : > { %v1651_v10 = vpop.f32.mrb[16].mxu1 }
 0x39b   : > { %v1162_v21 = vadd.f32 %v1651_v10, %v2158_v20  ;;  %v1153_v22 = vpop.f32.mrb[17].mxu1 }
 0x39c   : > { %v1154_v23 = vadd.f32 %v2158_v20, %v1153_v22  ;;  %v1652_v24 = vpop.f32.mrb[18].mxu1 }
 0x39d   : > { %v1456_v25 = vmul.f32 -1.442695, %v1162_v21  ;;  %v1165_v26 = vadd.f32 %v1652_v24, %v2158_v20  ;;  %v1156_v27 = vpop.f32.mrb[19].mxu1 }
 0x39e   : > { %v1454_v28 = vmul.f32 -1.442695, %v1154_v23  ;;  %v1157_v29 = vadd.f32 %v2158_v20, %v1156_v27 }
 0x39f   : > { %1738 = vpow2.f32 %v1456_v25  ;;  %v1457_v30 = vmul.f32 -1.442695, %v1165_v26 }
 0x3a0   : > { %1740 = vpow2.f32 %v1454_v28  ;;  %v1455_v31 = vmul.f32 -1.442695, %v1157_v29 }
 0x3a1   : > { %1742 = vpow2.f32 %v1457_v30 }
 0x3a2   : > { %1744 = vpow2.f32 %v1455_v31  ;;  %v1655_v32 = vpop.f32.mrb[20].mxu1 }
 0x3a3   : > { %v1178_v33 = vadd.f32 %v1655_v32, %v2158_v20  ;;  %v1169_v34 = vpop.f32.mrb[21].mxu1 }
 0x3a4   : > { %v1170_v35 = vadd.f32 %v2158_v20, %v1169_v34  ;;  %v1656_v36 = vpop.f32.mrb[22].mxu1 }
 0x3a5   : > { %v1460_v37 = vmul.f32 -1.442695, %v1178_v33  ;;  %v1181_v38 = vadd.f32 %v1656_v36, %v2158_v20  ;;  %v1172_v39 = vpop.f32.mrb[23].mxu1 }
 0x3a6   : > { %v1458_v40 = vmul.f32 -1.442695, %v1170_v35  ;;  %v1173_v41 = vadd.f32 %v2158_v20, %v1172_v39 }
 0x3a7   : > { %1746 = vpow2.f32 %v1460_v37  ;;  %v1461_v42 = vmul.f32 -1.442695, %v1181_v38 }
 0x3a8   : > { %1748 = vpow2.f32 %v1458_v40  ;;  %v1459_v43 = vmul.f32 -1.442695, %v1173_v41 }
 0x3a9   : > { %v1739_v44 = vpop.eup %1738  ;;  %1750 = vpow2.f32 %v1461_v42 }
 0x3aa   : > { %v1741_v45 = vpop.eup %1740  ;;  %v1266_v47 = vadd.f32 1.0, %v1739_v44  ;;  %1752 = vpow2.f32 %v1459_v43  ;;  %v1659_v48 = vpop.f32.mrb[24].mxu1 }
 0x3ab   : > { %v1743_v49 = vpop.eup %1742  ;;  %v1264_v50 = vadd.f32 1.0, %v1741_v45  ;;  %v1194_v51 = vadd.f32 %v1659_v48, %v2158_v20  ;;  %v1185_v52 = vpop.f32.mrb[25].mxu1 }
 0x3ac   : > { %v1745_v53 = vpop.eup %1744  ;;  %1754 = vrcp.f32 %v1266_v47  ;;  %v1267_v54 = vadd.f32 1.0, %v1743_v49  ;;  %v1186_v55 = vadd.f32 %v2158_v20, %v1185_v52  ;;  %v1660_v56 = vpop.f32.mrb[26].mxu1 }
 0x3ad   : > { %1756 = vrcp.f32 %v1264_v50  ;;  %v1265_v46 = vadd.f32 1.0, %v1745_v53  ;;  %v1464_v57 = vmul.f32 -1.442695, %v1194_v51  ;;  %v1197_v58 = vadd.f32 %v1660_v56, %v2158_v20  ;;  %v1188_v59 = vpop.f32.mrb[27].mxu1 }
 0x3ae   : > { %1758 = vrcp.f32 %v1267_v54  ;;  %v1462_v60 = vmul.f32 -1.442695, %v1186_v55  ;;  %v1189_v61 = vadd.f32 %v2158_v20, %v1188_v59 }
 0x3af   : > { %1760 = vrcp.f32 %v1265_v46  ;;  %v1465_v62 = vmul.f32 -1.442695, %v1197_v58 }
 0x3b0   : > { %1762 = vpow2.f32 %v1464_v57  ;;  %v1463_v0 = vmul.f32 -1.442695, %v1189_v61 }
 0x3b1   : > { %v1747_v1 = vpop.eup %1746  ;;  %1764 = vpow2.f32 %v1462_v60 }
 0x3b2   : > { %v1749_v2 = vpop.eup %1748  ;;  %v1270_v3 = vadd.f32 1.0, %v1747_v1  ;;  %1766 = vpow2.f32 %v1465_v62  ;;  %v1663_v4 = vpop.f32.mrb[28].mxu1 }
 0x3b3   : > { %v1751_v5 = vpop.eup %1750  ;;  %v1268_v6 = vadd.f32 1.0, %v1749_v2  ;;  %1768 = vpow2.f32 %v1463_v0  ;;  %v1210_v7 = vadd.f32 %v1663_v4, %v2158_v20  ;;  %v1201_v8 = vpop.f32.mrb[29].mxu1 }
 0x3b4   : > { %v1753_v9 = vpop.eup %1752  ;;  %1770 = vrcp.f32 %v1270_v3  ;;  %v1271_v63 = vadd.f32 1.0, %v1751_v5  ;;  %v1202_v11 = vadd.f32 %v2158_v20, %v1201_v8  ;;  %v1664_v12 = vpop.f32.mrb[30].mxu1 }
 0x3b5   : > { %1772 = vrcp.f32 %v1268_v6  ;;  %v1269_v13 = vadd.f32 1.0, %v1753_v9  ;;  %v1468_v14 = vmul.f32 -1.442695, %v1210_v7  ;;  %v1213_v15 = vadd.f32 %v1664_v12, %v2158_v20  ;;  %v1204_v16 = vpop.f32.mrb[31].mxu1 }
 0x3b6   : > { %v1755_v17 = vpop.eup %1754  ;;  %1774 = vrcp.f32 %v1271_v63  ;;  %v1466_v18 = vmul.f32 -1.442695, %v1202_v11  ;;  %v1205_v19 = vadd.f32 %v2158_v20, %v1204_v16 }
 0x3b7   : > { %v1757_v10 = vpop.eup %1756  ;;  %1314 = vst [vmem:[%s2179_s27 + $0x10] sm:$0xff] %v1755_v17  ;;  %1776 = vrcp.f32 %v1269_v13  ;;  %v1469_v21 = vmul.f32 -1.442695, %v1213_v15 }
 0x3b8   : > { %v1759_v22 = vpop.eup %1758  ;;  %1312 = vst [vmem:[%s2179_s27] sm:$0xff] %v1757_v10  ;;  %1778 = vpow2.f32 %v1468_v14  ;;  %v1467_v23 = vmul.f32 -1.442695, %v1205_v19 }
 0x3b9   : > { %v1761_v24 = vpop.eup %1760  ;;  %1315 = vst [vmem:[%s2179_s27 + $0x18] sm:$0xff] %v1759_v22  ;;  %1780 = vpow2.f32 %v1466_v18 }
 0x3ba   : > { %v1763_v25 = vpop.eup %1762  ;;  %1313 = vst [vmem:[%s2179_s27 + $0x8] sm:$0xff] %v1761_v24  ;;  %1782 = vpow2.f32 %v1469_v21 }
 0x3bb   : > { %v1765_v20 = vpop.eup %1764  ;;  %v1274_v26 = vadd.f32 1.0, %v1763_v25  ;;  %1784 = vpow2.f32 %v1467_v23 }
 0x3bc   : > { %v1767_v27 = vpop.eup %1766  ;;  %v1272_v28 = vadd.f32 1.0, %v1765_v20 }
 0x3bd   : > { %v1769_v29 = vpop.eup %1768  ;;  %1786 = vrcp.f32 %v1274_v26  ;;  %v1275_v30 = vadd.f32 1.0, %v1767_v27 }
 0x3be   : > { %v1771_v31 = vpop.eup %1770  ;;  %1788 = vrcp.f32 %v1272_v28  ;;  %v1273_v32 = vadd.f32 1.0, %v1769_v29 }
 0x3bf   : > { %v1773_v33 = vpop.eup %1772  ;;  %1318 = vst [vmem:[%s2179_s27 + $0x30] sm:$0xff] %v1771_v31  ;;  %1790 = vrcp.f32 %v1275_v30 }
 0x3c0   : > { %v1775_v34 = vpop.eup %1774  ;;  %1316 = vst [vmem:[%s2179_s27 + $0x20] sm:$0xff] %v1773_v33  ;;  %1792 = vrcp.f32 %v1273_v32 }
 0x3c1   : > { %v1777_v35 = vpop.eup %1776  ;;  %1319 = vst [vmem:[%s2179_s27 + $0x38] sm:$0xff] %v1775_v34 }
 0x3c2   : > { %v1779_v36 = vpop.eup %1778  ;;  %1317 = vst [vmem:[%s2179_s27 + $0x28] sm:$0xff] %v1777_v35 }
 0x3c3   : > { %v1781_v37 = vpop.eup %1780  ;;  %v1278_v38 = vadd.f32 1.0, %v1779_v36 }
 0x3c4   : > { %v1783_v39 = vpop.eup %1782  ;;  %v1276_v40 = vadd.f32 1.0, %v1781_v37 }
 0x3c5   : > { %v1785_v41 = vpop.eup %1784  ;;  %1794 = vrcp.f32 %v1278_v38  ;;  %v1279_v42 = vadd.f32 1.0, %v1783_v39 }
 0x3c6   : > { %1796 = vrcp.f32 %v1276_v40  ;;  %v1277_v43 = vadd.f32 1.0, %v1785_v41 }
 0x3c7   : > { %v1787_v44 = vpop.eup %1786  ;;  %1798 = vrcp.f32 %v1279_v42 }
 0x3c8   : > { %v1789_v45 = vpop.eup %1788  ;;  %1322 = vst [vmem:[%s2179_s27 + $0x50] sm:$0xff] %v1787_v44  ;;  %1800 = vrcp.f32 %v1277_v43 }
 0x3c9   : > { %v1791_v47 = vpop.eup %1790  ;;  %1320 = vst [vmem:[%s2179_s27 + $0x40] sm:$0xff] %v1789_v45 }
 0x3ca   : > { %v1793_v48 = vpop.eup %1792  ;;  %1323 = vst [vmem:[%s2179_s27 + $0x58] sm:$0xff] %v1791_v47 }
 0x3cb   : > { %1321 = vst [vmem:[%s2179_s27 + $0x48] sm:$0xff] %v1793_v48 }
 0x3cf   : > { %v1795_v49 = vpop.eup %1794 }
 0x3d0   : > { %v1797_v50 = vpop.eup %1796  ;;  %1326 = vst [vmem:[%s2179_s27 + $0x70] sm:$0xff] %v1795_v49 }
 0x3d1   : > { %v1799_v51 = vpop.eup %1798  ;;  %1324 = vst [vmem:[%s2179_s27 + $0x60] sm:$0xff] %v1797_v50 }
 0x3d2   : > { %v1801_v52 = vpop.eup %1800  ;;  %1327 = vst [vmem:[%s2179_s27 + $0x78] sm:$0xff] %v1799_v51 }
 0x3d3   : > { %1325 = vst [vmem:[%s2179_s27 + $0x68] sm:$0xff] %v1801_v52 }
 0x3d4   : > { %1815 = shalt.err (!%p1812_p3)
}
 0x3d5   : > { %s1816_s25 = scalar_lea.hbm %s2199_s17, 2048  ;;  %s1820_s28 = scalar_lea.hbm %s2258_s9, 4096 }
 0x3d6   : > { %p1817_p4 = scmp.ne.s32.totalorder %s2199_s17, %s1816_s25  ;;  %p1821_p9 = scmp.lt.u32.totalorder %s2199_s17, %s2258_s9 }
 0x3d7   : > { %p1822_p10 = scmp.lt.u32.totalorder %s1820_s28, %s1816_s25  ;;  %p1824_p12 = scmp.lt.u32.totalorder %s1816_s25, %s2199_s17 }
 0x3d8   : > { %p1818_p7 = pnand %p1817_p4, %p1957_p5 }
 0x3d9   : > { %p1823_p11 = por %p1822_p10, %p1821_p9 }
 0x3da   : > { %p1819_p8 = pneg %p1818_p7 }
 0x3db   : > { %p1825_p13 = por %p1824_p12, %p1823_p11 }
 0x3dd   : > { %p1826_p0 = pnand %p1825_p13, %p1819_p8 }
 0x3df   : > { %1829 = shalt.err (!%p1826_p0)
}
 0x3e0   : > { %s1867_s21 = smov 128   ;;  %s1868_s22 = smov 8  }
 0x3e1   : > { %1666 = dma.vmem_to_hbm [thread:$0]  (%p1957_p5), %s2201_s29, 2048, %s2199_s17, %s2208_s13, %s1867_s21, %s1867_s21, %s1868_s22  }
 0x3e2 PF: > { %p1672_p1 = scmp.ge.s32.totalorder %s1864_s12, 2  ;;  %s1357_s23 = sand.u32 1, %s1852_s30  }
 0x3e3   : > { %s1358_s24 = scalar_lea.sflag [#allocation3], %s1357_s23 }
 0x3e4   : > { %p1669_p2 = pnand %p1672_p1, %p1961_p6 }
 0x3e6   : > { %1847 = dma.done.wait (!%p1669_p2), %s1358_s24, 2048  }
 0x3e7   : > { %1849 = vsyncadd (!%p1669_p2), %s1358_s24, 4294965248  ;;  %p19_p3 = scmp.ge.s32.totalorder %s1944_s15, 4   ;;  %s2261_s30 = smov %s1856_s10 }
 0x3e8   : > { %s2262_s10 = smov %s1860_s11  ;;  %s2263_s11 = smov %s1955_s18 }
 0x3e9   : > { %s2264_s12 = smov %s1944_s15  ;;  %21 = sbr.rel (!%p19_p3) target bundleno = 3 (0x3), region = 91 }
 0x3f0   :  { %1363 = vsyncpa [#allocation3], 1 }
 0x3f1   :  { %1365 = vsyncpa [#allocation3 + $0x1], 1 }

</bundles_post_ra>
